<compile_context>
chip_gen: v5e
topology: v5e:2x2
jax: 0.10.0
libtpu: 0.0.40
codegen_flags: <defaults>
</compile_context>

<pallas_src>
import functools

import jax
import jax.numpy as jnp
import numpy as np
from jax.experimental import pallas as pl
from jax.experimental.pallas import tpu as pltpu


# --------------------------------------------------------------------------
# Synthetic stand-ins for property_signatures constants (the real library is
# not importable here; shapes follow the module's __init__ formula).
# --------------------------------------------------------------------------
NUM_SINGLE_VALUE_PROPERTIES = 4
NUM_COMPARISON_PROPERTIES = 8


def _round_up(x, m):
    return (x + m - 1) // m * m


# --------------------------------------------------------------------------
# Pallas kernel: fused 2-layer MLP (Linear -> ReLU -> Linear)
# --------------------------------------------------------------------------
def _mlp_kernel(x_ref, w1_ref, b1_ref, w2_ref, b2_ref, o_ref):
    # Layer 1: bf16 x bf16 on the MXU with f32 accumulation (ragged K=140 is
    # masked by Mosaic); bias add + ReLU in f32.
    h = jnp.dot(x_ref[...], w1_ref[...], preferred_element_type=jnp.float32)
    h = jnp.maximum(h + b1_ref[...], 0.0)
    # Layer 2: feed the MXU bf16 again; f32 accumulation + bias add.
    out = jnp.dot(h.astype(jnp.bfloat16), w2_ref[...],
                  preferred_element_type=jnp.float32)
    o_ref[...] = out + b2_ref[...]


def _choose_tile_rows(n, tile_cap):
    """Adaptive row tile: exact single tile for small batches, >=2 big tiles
    (512-row multiples) for large batches so v7x can use both TensorCores."""
    n16 = _round_up(n, 16)          # bf16 sublane quantum
    if n16 <= 1024:
        return n16
    return min(tile_cap, _round_up(pl.cdiv(n, 2), 512))


@functools.partial(jax.jit, static_argnames=("out_dim", "tile_cap"))
def prop_sig_io_mlp(feat_mat, w1p, b1p, w2p, b2p, *, out_dim, tile_cap=2048):
    """Runs the PropSigIOEncoder MLP on a (num_tasks, 5*feat_dim) feature matrix.

    Weights/biases must already be padded to a 128-wide hidden dim (done once
    at module init): w1p (K, 128) bf16, w2p (128, 128) bf16, b1p/b2p (1, 128)
    f32, with the padded columns/rows zero-filled.
    """
    n, k = feat_mat.shape
    h_pad = w1p.shape[1]

    # Feature matrix stays at its natural K (no lane padding, no HBM round
    # trip); cast only if the caller didn't already supply bf16.
    x = feat_mat if feat_mat.dtype == jnp.bfloat16 else feat_mat.astype(jnp.bfloat16)

    tile_rows = _choose_tile_rows(n, tile_cap)
    grid = (pl.cdiv(n, tile_rows),)

    out_padded = pl.pallas_call(
        _mlp_kernel,
        out_shape=jax.ShapeDtypeStruct((n, h_pad), jnp.float32),
        grid=grid,
        in_specs=[
            # x: row-tiled; last block is clipped by Pallas (rows independent).
            pl.BlockSpec((tile_rows, k), lambda i: (i, 0)),
            pl.BlockSpec((k, h_pad), lambda i: (0, 0)),          # w1: resident
            pl.BlockSpec((1, h_pad), lambda i: (0, 0)),          # b1: resident
            pl.BlockSpec((h_pad, h_pad), lambda i: (0, 0)),      # w2: resident
            pl.BlockSpec((1, h_pad), lambda i: (0, 0)),          # b2: resident
        ],
        out_specs=pl.BlockSpec((tile_rows, h_pad), lambda i: (i, 0)),
        compiler_params=pltpu.CompilerParams(
            # Row tiles are independent -> shard across TCs on v7x; neutral on
            # single-TC v5e/v6e.
            dimension_semantics=("parallel",)),
    )(x, w1p, b1p, w2p, b2p)

    # Restore the module's (N, 2H) output shape.  The kernel writes a
    # lane-dense 128-wide slab (padded columns are exactly zero); this column
    # slice is the only post-kernel copy left.
    return out_padded[:, :out_dim]


# --------------------------------------------------------------------------
# Module-equivalent wrapper
# --------------------------------------------------------------------------
class PropSigIOEncoderPallas:
    def __init__(self, max_num_inputs, hidden_size, key):
        self.max_num_inputs = max_num_inputs
        self.hidden_size = hidden_size
        self.num_sigs = NUM_SINGLE_VALUE_PROPERTIES + NUM_COMPARISON_PROPERTIES
        self.feat_dim = (self.num_sigs * self.max_num_inputs
                         + NUM_SINGLE_VALUE_PROPERTIES)

        in_dim = self.feat_dim * 5
        h2 = hidden_size * 2
        h_pad = _round_up(h2, 128)
        self.out_dim = h2

        k1, k2, k3, k4 = jax.random.split(key, 4)
        # deterministic synthetic init (kaiming-ish scale), stored as (in, out)
        self.w1 = jax.random.normal(k1, (in_dim, h2), jnp.float32) / np.sqrt(in_dim)
        self.b1 = jax.random.normal(k2, (h2,), jnp.float32) * 0.01
        self.w2 = jax.random.normal(k3, (h2, h2), jnp.float32) / np.sqrt(h2)
        self.b2 = jax.random.normal(k4, (h2,), jnp.float32) * 0.01

        # Pre-padded / pre-cast kernel operands, built ONCE here (not per
        # forward call).  Padded rows/cols are zero so the padded hidden
        # columns 64..127 stay exactly zero through both layers.
        self.w1p = jnp.zeros((in_dim, h_pad), jnp.bfloat16).at[:, :h2].set(
            self.w1.astype(jnp.bfloat16))
        self.b1p = jnp.zeros((1, h_pad), jnp.float32).at[0, :h2].set(self.b1)
        self.w2p = jnp.zeros((h_pad, h_pad), jnp.bfloat16).at[:h2, :h2].set(
            self.w2.astype(jnp.bfloat16))
        self.b2p = jnp.zeros((1, h_pad), jnp.float32).at[0, :h2].set(self.b2)

    def build_feat_mat(self, num_tasks, key):
        """Synthetic replacement for compute_example_signature():
        each of feat_dim signatures takes an integer value in [0, 5), and the
        feature matrix is its one-hot encoding: feat[t, i*5 + sig] = 1.0.
        Emitted directly in bf16 in the final layout so the kernel wrapper
        does no extra pad/cast HBM round trip."""
        # TODO(synk): the real property-signature computation operates on raw
        # Python I/O example objects and has no tensor/Pallas equivalent; a
        # further bandwidth win would be passing int signature indices and
        # doing layer 1 as an embedding-style gather instead of a 20%-dense
        # one-hot matmul.
        sig_vals = jax.random.randint(key, (num_tasks, self.feat_dim), 0, 5)
        feat = jax.nn.one_hot(sig_vals, 5, dtype=jnp.bfloat16)
        return feat.reshape(num_tasks, self.feat_dim * 5)

    def forward(self, feat_mat, needs_scatter_idx=False):
        io_embed = prop_sig_io_mlp(feat_mat, self.w1p, self.b1p,
                                   self.w2p, self.b2p, out_dim=self.out_dim)
        if needs_scatter_idx:
            sample_scatter_idx = jnp.arange(feat_mat.shape[0], dtype=jnp.int32)
            return io_embed, sample_scatter_idx
        return io_embed


# --------------------------------------------------------------------------
# Reference (plain jnp) for correctness check — mirrors the kernel's bf16
# operand precision with f32 accumulation (products of bf16 values are exact).
# --------------------------------------------------------------------------
def _reference_mlp(feat_mat, w1, b1, w2, b2):
    hp = jax.lax.Precision.HIGHEST
    x = feat_mat.astype(jnp.float32)                      # one-hot, bf16-exact
    w1b = w1.astype(jnp.bfloat16).astype(jnp.float32)
    w2b = w2.astype(jnp.bfloat16).astype(jnp.float32)
    h = jnp.maximum(jnp.dot(x, w1b, precision=hp) + b1, 0.0)
    h = h.astype(jnp.bfloat16).astype(jnp.float32)
    return jnp.dot(h, w2b, precision=hp) + b2


if __name__ == "__main__":
    key = jax.random.PRNGKey(0)
    k_params, k_feat_a, k_feat_b, k_feat_c = jax.random.split(key, 4)

    max_num_inputs = 2
    hidden_size = 32

    enc = PropSigIOEncoderPallas(max_num_inputs, hidden_size, k_params)

    # 1) Small batch (single 16-row tile, boundary-clipped to 8 rows).
    num_tasks = 8
    feat_small = enc.build_feat_mat(num_tasks, k_feat_a)
    io_embed, scatter_idx = enc.forward(feat_small, needs_scatter_idx=True)
    io_embed = jax.block_until_ready(io_embed)
    scatter_idx = jax.block_until_ready(scatter_idx)
    ref = _reference_mlp(feat_small, enc.w1, enc.b1, enc.w2, enc.b2)
    np.testing.assert_allclose(np.asarray(io_embed), np.asarray(ref),
                               rtol=1e-5, atol=1e-5)
    assert io_embed.shape == (num_tasks, hidden_size * 2)
    assert scatter_idx.shape == (num_tasks,)

    # 2) Medium batch: single non-divisible tile (304-row block over 300 rows).
    num_tasks_med = 300
    feat_med = enc.build_feat_mat(num_tasks_med, k_feat_b)
    io_med = jax.block_until_ready(enc.forward(feat_med))
    ref_med = _reference_mlp(feat_med, enc.w1, enc.b1, enc.w2, enc.b2)
    np.testing.assert_allclose(np.asarray(io_med), np.asarray(ref_med),
                               rtol=1e-5, atol=1e-5)
    assert io_med.shape == (num_tasks_med, hidden_size * 2)

    # 3) Large batch: exercises the 2-tile parallel grid (tile=1280, grid=2)
    #    with a clipped last block.
    num_tasks_big = 2500
    feat_big = enc.build_feat_mat(num_tasks_big, k_feat_c)
    io_big = jax.block_until_ready(enc.forward(feat_big))
    ref_big = _reference_mlp(feat_big, enc.w1, enc.b1, enc.w2, enc.b2)
    np.testing.assert_allclose(np.asarray(io_big), np.asarray(ref_big),
                               rtol=1e-5, atol=1e-5)
    assert io_big.shape == (num_tasks_big, hidden_size * 2)

    print("KERNEL_OK")
</pallas_src>

<mosaic_0001>
module attributes {stable_mosaic.version = 11 : i64} {
  func.func @_mlp_kernel(%arg0: i32, %arg1: memref<16x140xbf16, #tpu.memory_space<vmem>>, %arg2: memref<140x128xbf16, #tpu.memory_space<vmem>>, %arg3: memref<1x128xf32, #tpu.memory_space<vmem>>, %arg4: memref<128x128xbf16, #tpu.memory_space<vmem>>, %arg5: memref<1x128xf32, #tpu.memory_space<vmem>>, %arg6: memref<16x128xf32, #tpu.memory_space<vmem>>) attributes {dimension_semantics = [#tpu.dimension_semantics<parallel>], iteration_bounds = array<i64: 1>, scalar_prefetch = 0 : i64, scratch_operands = 0 : i64, tpu.core_type = #tpu.core_type<tc>, window_params = [{transform_indices = @transform_0, window_bounds = array<i64: 16, 140>}, {pipeline_mode = #tpu.pipeline_mode<synchronous>, transform_indices = @transform_1, window_bounds = array<i64: 140, 128>}, {pipeline_mode = #tpu.pipeline_mode<synchronous>, transform_indices = @transform_2, window_bounds = array<i64: 1, 128>}, {pipeline_mode = #tpu.pipeline_mode<synchronous>, transform_indices = @transform_3, window_bounds = array<i64: 128, 128>}, {pipeline_mode = #tpu.pipeline_mode<synchronous>, transform_indices = @transform_4, window_bounds = array<i64: 1, 128>}, {transform_indices = @transform_5, window_bounds = array<i64: 16, 128>}]} {
    %c0 = arith.constant 0 : index
    %c0_0 = arith.constant 0 : index
    %0 = vector.load %arg1[%c0, %c0_0] : memref<16x140xbf16, #tpu.memory_space<vmem>>, vector<16x140xbf16>
    %c0_1 = arith.constant 0 : index
    %c0_2 = arith.constant 0 : index
    %1 = vector.load %arg2[%c0_1, %c0_2] : memref<140x128xbf16, #tpu.memory_space<vmem>>, vector<140x128xbf16>
    %cst = arith.constant dense<0.000000e+00> : vector<16x128xf32>
    %2 = tpu.matmul %0, %1, %cst {dimension_numbers = #tpu.dot_dimension_numbers<[1], [0], [0], [1], [0, 0, 1, 1], [], []>} : vector<16x140xbf16>, vector<140x128xbf16>, vector<16x128xf32> -> vector<16x128xf32>
    %c0_3 = arith.constant 0 : index
    %c0_4 = arith.constant 0 : index
    %3 = vector.load %arg3[%c0_3, %c0_4] : memref<1x128xf32, #tpu.memory_space<vmem>>, vector<1x128xf32>
    %4 = vector.broadcast %3 : vector<1x128xf32> to vector<16x128xf32>
    %5 = arith.addf %2, %4 : vector<16x128xf32>
    %cst_5 = arith.constant 0.000000e+00 : f32
    %6 = vector.broadcast %cst_5 : f32 to vector<16x128xf32>
    %7 = arith.maximumf %5, %6 : vector<16x128xf32>
    %8 = arith.truncf %7 : vector<16x128xf32> to vector<16x128xbf16>
    %c0_6 = arith.constant 0 : index
    %c0_7 = arith.constant 0 : index
    %9 = vector.load %arg4[%c0_6, %c0_7] : memref<128x128xbf16, #tpu.memory_space<vmem>>, vector<128x128xbf16>
    %cst_8 = arith.constant dense<0.000000e+00> : vector<16x128xf32>
    %10 = tpu.matmul %8, %9, %cst_8 {dimension_numbers = #tpu.dot_dimension_numbers<[1], [0], [0], [1], [0, 0, 1, 1], [], []>} : vector<16x128xbf16>, vector<128x128xbf16>, vector<16x128xf32> -> vector<16x128xf32>
    %c0_9 = arith.constant 0 : index
    %c0_10 = arith.constant 0 : index
    %11 = vector.load %arg5[%c0_9, %c0_10] : memref<1x128xf32, #tpu.memory_space<vmem>>, vector<1x128xf32>
    %12 = vector.broadcast %11 : vector<1x128xf32> to vector<16x128xf32>
    %13 = arith.addf %10, %12 : vector<16x128xf32>
    %c0_11 = arith.constant 0 : index
    %c0_12 = arith.constant 0 : index
    %14 = vector.load %arg6[%c0_11, %c0_12] : memref<16x128xf32, #tpu.memory_space<vmem>>, vector<16x128xf32>
    tpu.vector_store %arg6[%c0_11, %c0_12], %13 {strides = array<i32>} : memref<16x128xf32, #tpu.memory_space<vmem>>, vector<16x128xf32>,
    return
  }
  func.func @transform_0(%arg0: i32) -> (i32, i32) {
    %c0_i32 = arith.constant 0 : i32
    %c0_i32_0 = arith.constant 0 : i32
    return %arg0, %c0_i32 : i32, i32
  }
  func.func @transform_1(%arg0: i32) -> (i32, i32) {
    %c0_i32 = arith.constant 0 : i32
    %c0_i32_0 = arith.constant 0 : i32
    %c0_i32_1 = arith.constant 0 : i32
    return %c0_i32, %c0_i32_0 : i32, i32
  }
  func.func @transform_2(%arg0: i32) -> (i32, i32) {
    %c0_i32 = arith.constant 0 : i32
    %c0_i32_0 = arith.constant 0 : i32
    %c0_i32_1 = arith.constant 0 : i32
    return %c0_i32, %c0_i32_0 : i32, i32
  }
  func.func @transform_3(%arg0: i32) -> (i32, i32) {
    %c0_i32 = arith.constant 0 : i32
    %c0_i32_0 = arith.constant 0 : i32
    %c0_i32_1 = arith.constant 0 : i32
    return %c0_i32, %c0_i32_0 : i32, i32
  }
  func.func @transform_4(%arg0: i32) -> (i32, i32) {
    %c0_i32 = arith.constant 0 : i32
    %c0_i32_0 = arith.constant 0 : i32
    %c0_i32_1 = arith.constant 0 : i32
    return %c0_i32, %c0_i32_0 : i32, i32
  }
  func.func @transform_5(%arg0: i32) -> (i32, i32) {
    %c0_i32 = arith.constant 0 : i32
    %c0_i32_0 = arith.constant 0 : i32
    return %arg0, %c0_i32 : i32, i32
  }
}

</mosaic_0001>

<bundles_post_ra>
// kernel: prop_sig_io_mlp.1
= control target key start
LH: loop header
LB: loop body
LE: loop exit
PB: predicated region body
PF: predicated region fallthrough
CT: control target
= control target key end

     0   :  { %10 = vsyncpa [#allocation3], 0  ;;  %s568_s0 = inlined_call_operand.hbm [shape: bf16[8,140], index: 0, kind: input, shape index: {}]   ;;  %s569_s1 = inlined_call_operand.hbm [shape: bf16[140,128], index: 1, kind: input, shape index: {}]   ;;  %s570_s2 = inlined_call_operand.vmem [shape: f32[1,128], index: 2, kind: input, shape index: {}]   ;;  %s571_s3 = inlined_call_operand.hbm [shape: bf16[128,128], index: 3, kind: input, shape index: {}]   ;;  %s572_s4 = inlined_call_operand.vmem [shape: f32[1,128], index: 4, kind: input, shape index: {}]   ;;  %s573_s5 = inlined_call_operand.hbm [shape: f32[8,128], index: 5, kind: output, shape index: {}]  }
   0x1   :  { %11 = vsyncpa [#allocation6], 0 }
   0x2   :  { %12 = vsyncpa [#allocation4], 0  ;;  %s30_s20 = sshll.u32 %s569_s1, 4  ;;  %s31_s20 = int_to_ptr.hbm [resolvable:$true] %s30_s20 }
   0x3   :  { %16 = vsyncadd [#allocation3], 128  ;;  %s506_s21 = smov [#allocation5]   ;;  %s17_s25 = sshll.u32 %s568_s0, 4  ;;  %s18_s25 = int_to_ptr.hbm [resolvable:$true] %s17_s25 }
   0x4   :  { %s32_s22 = sshll.u32 %s506_s21, 4  ;;  %s507_s26 = smov 64   ;;  %s33_s22 = int_to_ptr.vmem [resolvable:$true] %s32_s22 }
   0x5   :  { %s508_s27 = smov 4   ;;  %s509_s28 = smov [#allocation2]  }
   0x6   :  { %38 = dma.hbm_to_vmem [thread:$0]  %s31_s20, 1152, %s33_s22, [#allocation6], %s507_s26, %s507_s26, %s508_s27  }
   0x7   :  { %s19_s29 = sshll.u32 %s509_s28, 4  ;;  %s510_s30 = smov 128   ;;  %s20_s29 = int_to_ptr.vmem [resolvable:$true] %s19_s29 }
   0x8   :  { %s511_s6 = smov 8   ;;  %s45_s8 = sshll.u32 %s571_s3, 4  ;;  %s46_s8 = int_to_ptr.hbm [resolvable:$true] %s45_s8 }
   0x9   :  { %25 = dma.hbm_to_vmem [thread:$0]  %s18_s25, 128, %s20_s29, [#allocation3], %s510_s30, %s510_s30, %s511_s6  }
   0xa   :  { %s512_s9 = smov [#allocation7]  }
   0xb   :  { %s47_s0 = sshll.u32 %s512_s9, 4  ;;  %s48_s0 = int_to_ptr.vmem [resolvable:$true] %s47_s0 }
   0xc   :  { %53 = dma.hbm_to_vmem [thread:$0]  %s46_s8, 1024, %s48_s0, [#allocation6], %s507_s26, %s507_s26, %s508_s27  }
   0xd   :  { %500 = dma.done.wait [#allocation3], 256  }
   0xe   :  { %501 = vsyncadd [#allocation3], 4294967040 }
   0xf   :  { %502 = dma.done.wait [#allocation6], 2176  }
  0x10   :  { %503 = vsyncadd [#allocation6], 4294965120  ;;  %v384_v0 = vld [vmem:[#allocation5 + $0x38] sm:$0xff]  ;;  %v383_v1 = vld [vmem:[#allocation5 + $0x30] sm:$0xff]  ;;  %vm159_vm0 = vcmask 1045504   ;;  %vm155_vm1 = vcmask 97280  }
  0x11   :  { %163 = vmatpush.bf16.msra.mxu0 %v384_v0  ;;  %v340_v2 = vld [vmem:[#allocation5 + $0x40] sm:$0xf]  ;;  %v385_v3 = vld [vmem:[#allocation5 + $0x40] sm:$0x30]  ;;  %v375_v5 = vld [vmem:[#allocation2 + $0x4] sm:$0xf] }
  0x12   :  { %v341_v4 = vor.u32 %v385_v3, %v340_v2  ;;  %v302_v6 = vld [vmem:[#allocation2 + $0x8] sm:$0xf0]  ;;  %v393_v7 = vld [vmem:[#allocation7 + $0x38] sm:$0xff]  ;;  %v382_v10 = vld [vmem:[#allocation5 + $0x28] sm:$0xff] }
  0x13   :  { %v305_v9 = vor.u32 %v375_v5, %v302_v6  ;;  %262 = vmatpush.bf16.msra.mxu2 %v393_v7  ;;  %v392_v11 = vld [vmem:[#allocation7 + $0x30] sm:$0xff]  ;;  %v381_v12 = vld [vmem:[#allocation5 + $0x20] sm:$0xff]  ;;  %v379_v14 = vld [vmem:[#allocation5 + $0x10] sm:$0xff] }
  0x14   :  { %v161_v8 = vsel %vm159_vm0, %v341_v4, 0  ;;  %v380_v13 = vld [vmem:[#allocation5 + $0x18] sm:$0xff]  ;;  %v378_v15 = vld [vmem:[#allocation5 + $0x8] sm:$0xff]  ;;  %v377_v16 = vld [vmem:[#allocation5] sm:$0xff] }
  0x15   :  { %164 = vmatpush.bf16.msra.mxu0 %v383_v1  ;;  %184 = vmatpush.bf16.msra.mxu1 %v161_v8  ;;  %v300_v17 = vld [vmem:[#allocation2] sm:$0xf]  ;;  %v376_v18 = vld [vmem:[#allocation2 + $0x4] sm:$0xf0]  ;;  %v390_v21 = vld [vmem:[#allocation7 + $0x20] sm:$0xff] }
  0x16   :  { %v301_v19 = vor.u32 %v376_v18, %v300_v17  ;;  %v391_v20 = vld [vmem:[#allocation7 + $0x28] sm:$0xff]  ;;  %v389_v22 = vld [vmem:[#allocation7 + $0x18] sm:$0xff]  ;;  %v388_v23 = vld [vmem:[#allocation7 + $0x10] sm:$0xff] }
  0x17   :  { %263 = vmatpush.bf16.msra.mxu2 %v392_v11  ;;  %v387_v24 = vld [vmem:[#allocation7 + $0x8] sm:$0xff]  ;;  %v386_v25 = vld [vmem:[#allocation7] sm:$0xff] }
  0x18   :  { %342 = vmatmul.msk.bf16.vlgmr.msra.gmra.mxu1 %vm155_vm1, %v305_v9  ;;  %v402_v28 = vld [vmem:[%s570_s2] ss:$0 sm:$0xff] }
  0x19   :  { %165 = vmatpush.bf16.msra.mxu0 %v382_v10  ;;  %v403_v38 = vld [vmem:[%s572_s4] ss:$0 sm:$0xff] }
  0x1b   :  { %264 = vmatpush.bf16.msra.mxu2 %v391_v20 }
  0x1d   :  { %166 = vmatpush.bf16.msra.mxu0 %v381_v12 }
  0x1f   :  { %265 = vmatpush.bf16.msra.mxu2 %v390_v21 }
  0x21   :  { %167 = vmatpush.bf16.msra.mxu0 %v380_v13 }
  0x23   :  { %266 = vmatpush.bf16.msra.mxu2 %v389_v22 }
  0x25   :  { %168 = vmatpush.bf16.msra.mxu0 %v379_v14 }
  0x27   :  { %267 = vmatpush.bf16.msra.mxu2 %v388_v23 }
  0x29   :  { %169 = vmatpush.bf16.msra.mxu0 %v378_v15 }
  0x2b   :  { %268 = vmatpush.bf16.msra.mxu2 %v387_v24 }
  0x2d   :  { %170 = vmatpush.bf16.msra.mxu0 %v377_v16 }
  0x2f   :  { %269 = vmatpush.bf16.msra.mxu2 %v386_v25 }
  0x30   :  { %171 = vmatmul.bf16.vlgmr.msra.gmra.mxu0 %v301_v19 }
  0x95   :  { %v186_v26 = vpop.f32.mrf.mxu1 }
  0x9d   :  { %v188_v33 = vpop.f32.mrf.mxu1 }
  0xad   :  { %v172_v27 = vpop.f32.mrf.mxu0 }
  0xae   :  { %v173_v29 = vadd.f32 %v402_v28, %v172_v27 }
  0xb0   :  { %v187_v31 = vadd.f32 %v186_v26, %v173_v29 }
  0xb2   :  { %v191_v35 = vmax.f32 %v187_v31, 0.0 }
  0xb5   :  { %v174_v30 = vpop.f32.mrf.mxu0 }
  0xb6   :  { %v175_v32 = vadd.f32 %v402_v28, %v174_v30 }
  0xb8   :  { %v189_v34 = vadd.f32 %v188_v33, %v175_v32 }
  0xba   :  { %v192_v36 = vmax.f32 %v189_v34, 0.0 }
  0xbc   :  { %v193_v37 = vpack.c.bf16 %v192_v36, %v191_v35 }
  0xbe   :  { %270 = vmatmul.bf16.vlgmr.msra.gmra.mxu2 %v193_v37 }
 0x141   :  { %v271_v39 = vpop.f32.mrf.mxu2 }
 0x142   :  { %v272_v40 = vadd.f32 %v403_v38, %v271_v39 }
 0x144   :  { %276 = vst [vmem:[#allocation8] sm:$0xff] %v272_v40 }
 0x149   :  { %v273_v41 = vpop.f32.mrf.mxu2 }
 0x14a   :  { %v274_v42 = vadd.f32 %v403_v38, %v273_v41 }
 0x14c   :  { %277 = vst [vmem:[#allocation8 + $0x8] sm:$0xff] %v274_v42 }
 0x14d   :  { %281 = vsyncadd [#allocation4], 128  ;;  %s284_s14 = sshll.u32 %s573_s5, 4  ;;  %s513_s15 = smov [#allocation8]   ;;  %s285_s14 = int_to_ptr.hbm [resolvable:$true] %s284_s14 }
 0x14e   :  { %s282_s16 = sshll.u32 %s513_s15, 4  ;;  %s283_s16 = int_to_ptr.vmem [resolvable:$true] %s282_s16 }
 0x14f   :  { %290 = dma.vmem_to_hbm [thread:$0]  %s283_s16, 128, %s285_s14, [#allocation4], %s510_s30, %s510_s30, %s511_s6  }
 0x150   :  { %504 = dma.done.wait [#allocation4], 256  }
 0x151   :  { %505 = vsyncadd [#allocation4], 4294967040 }
 0x152   :  { %295 = vsyncpa [#allocation3], 1 }
 0x153   :  { %296 = vsyncpa [#allocation6], 1 }
 0x154   :  { %297 = vsyncpa [#allocation4], 1 }

</bundles_post_ra>
